<compile_context>
chip_gen: v6e
topology: v6e:2x2x1
jax: 0.10.0
libtpu: 0.0.40
codegen_flags: <defaults>
</compile_context>

<pallas_src>
import functools

import jax
import jax.numpy as jnp
import numpy as np
from jax import lax
from jax.experimental import pallas as pl
from jax.experimental.pallas import tpu as pltpu

EPS = 1e-5


def _rup(x, m):
    return (x + m - 1) // m * m


# ------------------------------ Pallas kernels ------------------------------

def _matmul_stats_kernel(a_ref, b_ref, o_ref, stats_ref):
    """Tiled matmul accumulating over the K grid axis directly into o_ref.

    On the last K step the finished (tm, tn) tile's per-channel sum and
    sum-of-squares are written to stats_ref (BatchNorm partials)."""
    k = pl.program_id(2)

    @pl.when(k == 0)
    def _():
        o_ref[...] = jnp.zeros_like(o_ref)

    o_ref[...] += jnp.dot(a_ref[...], b_ref[...],
                          preferred_element_type=jnp.float32)

    @pl.when(k == pl.num_programs(2) - 1)
    def _():
        y = o_ref[...]
        s1 = jnp.sum(y, axis=0, keepdims=True)
        s2 = jnp.sum(y * y, axis=0, keepdims=True)
        pad = jnp.zeros((6, y.shape[1]), jnp.float32)
        stats_ref[0] = jnp.concatenate([s1, s2, pad], axis=0)


def _scale_shift_kernel(stats_ref, gb_ref, o_ref, *, inv_m):
    """Reduce per-tile BN partials -> per-channel (scale, shift).

    var = E[y^2] - E[y]^2 in f32, clamped at 0 (post-conv activations are
    near zero-mean so cancellation is benign here)."""
    s = jnp.sum(stats_ref[...], axis=0)              # (8, Cp)
    mean = s[0:1, :] * inv_m
    var = jnp.maximum(s[1:2, :] * inv_m - mean * mean, 0.0)
    inv_std = lax.rsqrt(var + EPS)
    scale = gb_ref[0:1, :] * inv_std                 # gamma / sqrt(var + eps)
    shift = gb_ref[1:2, :] - mean * scale            # beta - mean * scale
    pad = jnp.zeros((6, scale.shape[1]), jnp.float32)
    o_ref[...] = jnp.concatenate([scale, shift, pad], axis=0)


def _bn_relu_kernel(y_ref, ss_ref, o_ref):
    o_ref[...] = jnp.maximum(y_ref[...] * ss_ref[0:1, :] + ss_ref[1:2, :], 0.0)


def _bn_relu_add_kernel(y_ref, res_ref, ss_ref, o_ref):
    o_ref[...] = (jnp.maximum(y_ref[...] * ss_ref[0:1, :] + ss_ref[1:2, :], 0.0)
                  + res_ref[...])


# ----------------------------- kernel wrappers -------------------------------

def _conv_matmul(a, b, tm, tn, tk):
    """a:(Mp,Kp) bf16 @ b:(Kp,Np) bf16 -> y:(Mp,Np) f32, stats:(mg,8,Np) f32."""
    Mp, Kp = a.shape
    Np = b.shape[1]
    mg, ng, kg = Mp // tm, Np // tn, Kp // tk
    return pl.pallas_call(
        _matmul_stats_kernel,
        out_shape=(jax.ShapeDtypeStruct((Mp, Np), jnp.float32),
                   jax.ShapeDtypeStruct((mg, 8, Np), jnp.float32)),
        grid_spec=pltpu.PrefetchScalarGridSpec(
            num_scalar_prefetch=0,
            grid=(mg, ng, kg),
            in_specs=[pl.BlockSpec((tm, tk), lambda m, n, k: (m, k)),
                      pl.BlockSpec((tk, tn), lambda m, n, k: (k, n))],
            out_specs=(pl.BlockSpec((tm, tn), lambda m, n, k: (m, n)),
                       pl.BlockSpec((1, 8, tn), lambda m, n, k: (m, 0, n)))),
        compiler_params=pltpu.CompilerParams(
            dimension_semantics=("parallel", "parallel", "arbitrary")),
    )(a, b)


def _bn_relu_apply(y_pad, ss, res_pad, tm):
    """Tiled fused BN scale/shift + ReLU (+ residual add)."""
    Mp, Np = y_pad.shape
    mg = Mp // tm
    y_spec = pl.BlockSpec((tm, Np), lambda m: (m, 0))
    ss_spec = pl.BlockSpec((8, Np), lambda m: (0, 0))
    if res_pad is None:
        kernel, in_specs, args = _bn_relu_kernel, [y_spec, ss_spec], (y_pad, ss)
    else:
        kernel = _bn_relu_add_kernel
        in_specs = [y_spec, pl.BlockSpec((tm, Np), lambda m: (m, 0)), ss_spec]
        args = (y_pad, res_pad, ss)
    return pl.pallas_call(
        kernel,
        out_shape=jax.ShapeDtypeStruct((Mp, Np), jnp.float32),
        grid_spec=pltpu.PrefetchScalarGridSpec(
            num_scalar_prefetch=0, grid=(mg,),
            in_specs=in_specs,
            out_specs=pl.BlockSpec((tm, Np), lambda m: (m, 0))),
        compiler_params=pltpu.CompilerParams(
            dimension_semantics=("parallel",)),
    )(*args)


# ------------------------------- model pieces --------------------------------

def _im2col(x, kh, kw, stride, pad):
    """x:(N,H,W,C) -> (N*Ho*Wo, kh*kw*C) with (tap-major, channel-minor) cols."""
    n, h, w, c = x.shape
    ho = (h + 2 * pad - kh) // stride + 1
    wo = (w + 2 * pad - kw) // stride + 1
    xp = jnp.pad(x, ((0, 0), (pad, pad), (pad, pad), (0, 0)))
    cols = [xp[:, i:i + stride * ho:stride, j:j + stride * wo:stride, :]
            for i in range(kh) for j in range(kw)]
    patches = jnp.concatenate(cols, axis=-1)
    return patches.reshape(n * ho * wo, kh * kw * c), (n, ho, wo)


def _pick_tiles(m, k, n):
    m8 = _rup(m, 8)
    tm = m8 if m8 <= 512 else 256
    mp = _rup(m, tm)
    tn = min(256, _rup(n, 128))
    np_ = _rup(n, tn)
    kp = _rup(k, 128)
    tk = 256 if kp % 256 == 0 else 128
    return tm, mp, tn, np_, tk, kp


def conv_block_fwd(x, p, stride, residual=None):
    """ConvBlock: Conv3x3(stride, pad=1) + BatchNorm2d(batch stats) + ReLU.
    If `residual` is given, it is added AFTER the ReLU (fused in-kernel)."""
    kh, kw, cin, cout = p['w'].shape
    patches, (n, ho, wo) = _im2col(x, kh, kw, stride, kh // 2)
    m, k = patches.shape
    tm, mp, tn, np_, tk, kp = _pick_tiles(m, k, cout)

    # MXU operands in bf16 (f32 accumulation).  The conv bias is omitted: it
    # cancels exactly under training-mode BatchNorm (it only shifts the mean).
    a = jnp.pad(patches, ((0, mp - m), (0, kp - k))).astype(jnp.bfloat16)
    b = jnp.pad(p['w'].reshape(k, cout),
                ((0, kp - k), (0, np_ - cout))).astype(jnp.bfloat16)
    y_pad, stats = _conv_matmul(a, b, tm, tn, tk)

    gb = jnp.zeros((8, np_), jnp.float32)
    gb = gb.at[0, :cout].set(p['gamma']).at[1, :cout].set(p['beta'])
    ss = pl.pallas_call(
        functools.partial(_scale_shift_kernel, inv_m=1.0 / m),
        out_shape=jax.ShapeDtypeStruct((8, np_), jnp.float32),
    )(stats, gb)

    res_pad = None
    if residual is not None:
        res_pad = jnp.pad(residual.reshape(m, cout),
                          ((0, mp - m), (0, np_ - cout)))
    out_pad = _bn_relu_apply(y_pad, ss, res_pad, tm)
    return out_pad[:m, :cout].reshape(n, ho, wo, cout)


def residual_block_fwd(params, x_nchw, is_down):
    """Pallas forward for the PyTorch ResidualBlock (NCHW in / NCHW out)."""
    x = jnp.transpose(x_nchw.astype(jnp.float32), (0, 2, 3, 1))      # -> NHWC
    if is_down:
        shortcut = conv_block_fwd(x, params['short'], stride=2)      # convBlock(x)
        h = conv_block_fwd(x, params['rf1'], stride=2)
        out = conv_block_fwd(h, params['rf2'], stride=1, residual=shortcut)
    else:
        h = conv_block_fwd(x, params['rf1'], stride=1)
        out = conv_block_fwd(h, params['rf2'], stride=1, residual=x)
    return jnp.transpose(out, (0, 3, 1, 2))                          # -> NCHW


# -------------------------------- parameters ---------------------------------

class _KeyGen:
    def __init__(self, key):
        self._key = key

    def __call__(self):
        self._key, k = jax.random.split(self._key)
        return k


def _init_conv_block(kg, cin, cout):
    fan_in = cin * 9
    bound = 1.0 / fan_in ** 0.5
    return {'w': jax.random.uniform(kg(), (3, 3, cin, cout), jnp.float32,
                                    -bound, bound),
            'b': jax.random.uniform(kg(), (cout,), jnp.float32, -bound, bound),
            'gamma': jnp.ones((cout,), jnp.float32),
            'beta': jnp.zeros((cout,), jnp.float32)}


def init_residual_block(key, cin, cout):
    kg = _KeyGen(key)
    return {'short': _init_conv_block(kg, cin, cout),   # self.convBlock (stride 2)
            'rf1': _init_conv_block(kg, cin, cout),
            'rf2': _init_conv_block(kg, cout, cout)}


# ---------------------------- pure-JAX reference -----------------------------

def _ref_conv_block(x, p, stride):
    y = lax.conv_general_dilated(
        x, p['w'], window_strides=(stride, stride), padding=((1, 1), (1, 1)),
        dimension_numbers=('NHWC', 'HWIO', 'NHWC')) + p['b']
    mean = jnp.mean(y, axis=(0, 1, 2))
    var = jnp.mean((y - mean) ** 2, axis=(0, 1, 2))
    yn = (y - mean) * lax.rsqrt(var + EPS)
    return jnp.maximum(yn * p['gamma'] + p['beta'], 0.0)


def _ref_residual_block(params, x_nchw, is_down):
    x = jnp.transpose(x_nchw.astype(jnp.float32), (0, 2, 3, 1))
    if is_down:
        res = _ref_conv_block(x, params['short'], 2)
        h = _ref_conv_block(x, params['rf1'], 2)
    else:
        res = x
        h = _ref_conv_block(x, params['rf1'], 1)
    h = _ref_conv_block(h, params['rf2'], 1)
    return jnp.transpose(h + res, (0, 3, 1, 2))


# ------------------------------------ main ------------------------------------

if __name__ == "__main__":
    root = jax.random.PRNGKey(0)
    k_down, k_id, k_x = jax.random.split(root, 3)

    # ResidualBlock(4 -> 16, is_down_sampling=True):  (2,4,16,16) -> (2,16,8,8)
    p_down = init_residual_block(k_down, 4, 16)
    # ResidualBlock(16 -> 16, is_down_sampling=False): identity shortcut
    p_id = init_residual_block(k_id, 16, 16)

    x = jax.random.normal(k_x, (2, 4, 16, 16), jnp.float32)

    fwd_down = jax.jit(functools.partial(residual_block_fwd, is_down=True))
    fwd_id = jax.jit(functools.partial(residual_block_fwd, is_down=False))

    y_down = jax.block_until_ready(fwd_down(p_down, x))
    y_id = jax.block_until_ready(fwd_id(p_id, y_down))

    assert y_down.shape == (2, 16, 8, 8)
    assert y_id.shape == (2, 16, 8, 8)
    assert bool(jnp.all(jnp.isfinite(y_down)))
    assert bool(jnp.all(jnp.isfinite(y_id)))

    # Pure-JAX f32 reference (bf16 MXU operands -> loose tolerance).
    r_down = _ref_residual_block(p_down, x, True)
    r_id = _ref_residual_block(p_id, y_down, False)
    np.testing.assert_allclose(np.asarray(y_down), np.asarray(r_down),
                               rtol=0.1, atol=0.1)
    np.testing.assert_allclose(np.asarray(y_id), np.asarray(r_id),
                               rtol=0.1, atol=0.1)

    print("KERNEL_OK")
</pallas_src>

<mosaic_0001>
module attributes {stable_mosaic.version = 11 : i64} {
  func.func @_matmul_stats_kernel(%arg0: i32, %arg1: i32, %arg2: i32, %arg3: memref<128x128xbf16, #tpu.memory_space<vmem>>, %arg4: memref<128x128xbf16, #tpu.memory_space<vmem>>, %arg5: memref<128x128xf32, #tpu.memory_space<vmem>>, %arg6: memref<1x8x128xf32, #tpu.memory_space<vmem>>) attributes {dimension_semantics = [#tpu.dimension_semantics<parallel>, #tpu.dimension_semantics<parallel>, #tpu.dimension_semantics<arbitrary>], iteration_bounds = array<i64: 1, 1, 1>, scalar_prefetch = 0 : i64, scratch_operands = 0 : i64, tpu.core_type = #tpu.core_type<tc>, window_params = [{transform_indices = @transform_0, window_bounds = array<i64: 128, 128>}, {transform_indices = @transform_1, window_bounds = array<i64: 128, 128>}, {transform_indices = @transform_2, window_bounds = array<i64: 128, 128>}, {transform_indices = @transform_3, window_bounds = array<i64: 1, 8, 128>}]} {
    %c0_i32 = arith.constant 0 : i32
    %0 = arith.cmpi eq, %arg2, %c0_i32 : i32
    %1 = arith.extui %0 : i1 to i32
    %c0_i32_0 = arith.constant 0 : i32
    %2 = arith.cmpi ne, %1, %c0_i32_0 : i32
    scf.if %2 {
      %cst_10 = arith.constant 0.000000e+00 : f32
      %12 = vector.broadcast %cst_10 : f32 to vector<128x128xf32>
      %c0_11 = arith.constant 0 : index
      %c0_12 = arith.constant 0 : index
      %13 = vector.load %arg5[%c0_11, %c0_12] : memref<128x128xf32, #tpu.memory_space<vmem>>, vector<128x128xf32>
      tpu.vector_store %arg5[%c0_11, %c0_12], %12 {strides = array<i32>} : memref<128x128xf32, #tpu.memory_space<vmem>>, vector<128x128xf32>,
    } else {
    }
    %c0 = arith.constant 0 : index
    %c0_1 = arith.constant 0 : index
    %3 = vector.load %arg5[%c0, %c0_1] : memref<128x128xf32, #tpu.memory_space<vmem>>, vector<128x128xf32>
    %c0_2 = arith.constant 0 : index
    %c0_3 = arith.constant 0 : index
    %4 = vector.load %arg3[%c0_2, %c0_3] : memref<128x128xbf16, #tpu.memory_space<vmem>>, vector<128x128xbf16>
    %c0_4 = arith.constant 0 : index
    %c0_5 = arith.constant 0 : index
    %5 = vector.load %arg4[%c0_4, %c0_5] : memref<128x128xbf16, #tpu.memory_space<vmem>>, vector<128x128xbf16>
    %cst = arith.constant dense<0.000000e+00> : vector<128x128xf32>
    %6 = tpu.matmul %4, %5, %cst {dimension_numbers = #tpu.dot_dimension_numbers<[1], [0], [0], [1], [0, 0, 1, 1], [], []>} : vector<128x128xbf16>, vector<128x128xbf16>, vector<128x128xf32> -> vector<128x128xf32>
    %7 = arith.addf %3, %6 : vector<128x128xf32>
    %c0_6 = arith.constant 0 : index
    %c0_7 = arith.constant 0 : index
    %8 = vector.load %arg5[%c0_6, %c0_7] : memref<128x128xf32, #tpu.memory_space<vmem>>, vector<128x128xf32>
    tpu.vector_store %arg5[%c0_6, %c0_7], %7 {strides = array<i32>} : memref<128x128xf32, #tpu.memory_space<vmem>>, vector<128x128xf32>,
    %c0_i32_8 = arith.constant 0 : i32
    %9 = arith.cmpi eq, %arg2, %c0_i32_8 : i32
    %10 = arith.extui %9 : i1 to i32
    %c0_i32_9 = arith.constant 0 : i32
    %11 = arith.cmpi ne, %10, %c0_i32_9 : i32
    scf.if %11 {
      %c0_10 = arith.constant 0 : index
      %c0_11 = arith.constant 0 : index
      %12 = vector.load %arg5[%c0_10, %c0_11] : memref<128x128xf32, #tpu.memory_space<vmem>>, vector<128x128xf32>
      %cst_12 = arith.constant dense<0.000000e+00> : vector<128xf32>
      %13 = vector.multi_reduction <add>, %12, %cst_12 [0] : vector<128x128xf32> to vector<128xf32>
      %14 = vector.shape_cast %13 : vector<128xf32> to vector<1x128xf32>
      %15 = arith.mulf %12, %12 : vector<128x128xf32>
      %cst_13 = arith.constant dense<0.000000e+00> : vector<128xf32>
      %16 = vector.multi_reduction <add>, %15, %cst_13 [0] : vector<128x128xf32> to vector<128xf32>
      %17 = vector.shape_cast %16 : vector<128xf32> to vector<1x128xf32>
      %cst_14 = arith.constant 0.000000e+00 : f32
      %18 = vector.broadcast %cst_14 : f32 to vector<6x128xf32>
      %19 = tpu.concatenate %14, %17, %18 in 0 : vector<1x128xf32>, vector<1x128xf32>, vector<6x128xf32> -> vector<8x128xf32>
      %c0_15 = arith.constant 0 : index
      %c0_16 = arith.constant 0 : index
      %c0_17 = arith.constant 0 : index
      %20 = vector.load %arg6[%c0_15, %c0_16, %c0_17] : memref<1x8x128xf32, #tpu.memory_space<vmem>>, vector<1x8x128xf32>
      %21 = vector.shape_cast %20 : vector<1x8x128xf32> to vector<8x128xf32>
      %22 = vector.shape_cast %19 : vector<8x128xf32> to vector<1x8x128xf32>
      tpu.vector_store %arg6[%c0_15, %c0_16, %c0_17], %22 {strides = array<i32>} : memref<1x8x128xf32, #tpu.memory_space<vmem>>, vector<1x8x128xf32>,
    } else {
    }
    return
  }
  func.func @transform_0(%arg0: i32, %arg1: i32, %arg2: i32) -> (i32, i32) {
    %c0_i32 = arith.constant 0 : i32
    return %arg0, %arg2 : i32, i32
  }
  func.func @transform_1(%arg0: i32, %arg1: i32, %arg2: i32) -> (i32, i32) {
    %c0_i32 = arith.constant 0 : i32
    return %arg2, %arg1 : i32, i32
  }
  func.func @transform_2(%arg0: i32, %arg1: i32, %arg2: i32) -> (i32, i32) {
    %c0_i32 = arith.constant 0 : i32
    return %arg0, %arg1 : i32, i32
  }
  func.func @transform_3(%arg0: i32, %arg1: i32, %arg2: i32) -> (i32, i32, i32) {
    %c0_i32 = arith.constant 0 : i32
    %c0_i32_0 = arith.constant 0 : i32
    return %arg0, %c0_i32, %arg1 : i32, i32, i32
  }
}

module attributes {stable_mosaic.version = 11 : i64} {
  func.func @_scale_shift_kernel(%arg0: memref<1x8x128xf32, #tpu.memory_space<vmem>>, %arg1: memref<8x128xf32, #tpu.memory_space<vmem>>, %arg2: memref<8x128xf32, #tpu.memory_space<vmem>>) attributes {dimension_semantics = [], scalar_prefetch = 0 : i64, scratch_operands = 0 : i64, tpu.core_type = #tpu.core_type<tc>} {
    %c0 = arith.constant 0 : index
    %c0_0 = arith.constant 0 : index
    %c0_1 = arith.constant 0 : index
    %0 = vector.load %arg0[%c0, %c0_0, %c0_1] : memref<1x8x128xf32, #tpu.memory_space<vmem>>, vector<1x8x128xf32>
    %cst = arith.constant dense<0.000000e+00> : vector<8x128xf32>
    %1 = vector.multi_reduction <add>, %0, %cst [0] : vector<1x8x128xf32> to vector<8x128xf32>
    %2 = vector.extract_strided_slice %1 {offsets = [0, 0], sizes = [1, 128], strides = [1, 1]} : vector<8x128xf32> to vector<1x128xf32>
    %cst_2 = arith.constant 7.812500e-03 : f32
    %3 = vector.broadcast %cst_2 : f32 to vector<1x128xf32>
    %4 = arith.mulf %2, %3 : vector<1x128xf32>
    %5 = vector.extract_strided_slice %1 {offsets = [1, 0], sizes = [1, 128], strides = [1, 1]} : vector<8x128xf32> to vector<1x128xf32>
    %cst_3 = arith.constant 7.812500e-03 : f32
    %6 = vector.broadcast %cst_3 : f32 to vector<1x128xf32>
    %7 = arith.mulf %5, %6 : vector<1x128xf32>
    %8 = arith.mulf %4, %4 : vector<1x128xf32>
    %9 = arith.subf %7, %8 : vector<1x128xf32>
    %cst_4 = arith.constant 0.000000e+00 : f32
    %10 = vector.broadcast %cst_4 : f32 to vector<1x128xf32>
    %11 = arith.maximumf %9, %10 : vector<1x128xf32>
    %cst_5 = arith.constant 9.99999974E-6 : f32
    %12 = vector.broadcast %cst_5 : f32 to vector<1x128xf32>
    %13 = arith.addf %11, %12 : vector<1x128xf32>
    %14 = math.rsqrt %13 : vector<1x128xf32>
    %c0_6 = arith.constant 0 : index
    %c0_7 = arith.constant 0 : index
    %15 = vector.load %arg1[%c0_6, %c0_7] : memref<8x128xf32, #tpu.memory_space<vmem>>, vector<1x128xf32>
    %16 = arith.mulf %15, %14 : vector<1x128xf32>
    %c1 = arith.constant 1 : index
    %c0_8 = arith.constant 0 : index
    %17 = vector.load %arg1[%c1, %c0_8] : memref<8x128xf32, #tpu.memory_space<vmem>>, vector<1x128xf32>
    %18 = arith.mulf %4, %16 : vector<1x128xf32>
    %19 = arith.subf %17, %18 : vector<1x128xf32>
    %cst_9 = arith.constant 0.000000e+00 : f32
    %20 = vector.broadcast %cst_9 : f32 to vector<6x128xf32>
    %21 = tpu.concatenate %16, %19, %20 in 0 : vector<1x128xf32>, vector<1x128xf32>, vector<6x128xf32> -> vector<8x128xf32>
    %c0_10 = arith.constant 0 : index
    %c0_11 = arith.constant 0 : index
    %22 = vector.load %arg2[%c0_10, %c0_11] : memref<8x128xf32, #tpu.memory_space<vmem>>, vector<8x128xf32>
    tpu.vector_store %arg2[%c0_10, %c0_11], %21 {strides = array<i32>} : memref<8x128xf32, #tpu.memory_space<vmem>>, vector<8x128xf32>,
    return
  }
}

module attributes {stable_mosaic.version = 11 : i64} {
  func.func @_bn_relu_kernel(%arg0: i32, %arg1: memref<128x128xf32, #tpu.memory_space<vmem>>, %arg2: memref<8x128xf32, #tpu.memory_space<vmem>>, %arg3: memref<128x128xf32, #tpu.memory_space<vmem>>) attributes {dimension_semantics = [#tpu.dimension_semantics<parallel>], iteration_bounds = array<i64: 1>, scalar_prefetch = 0 : i64, scratch_operands = 0 : i64, tpu.core_type = #tpu.core_type<tc>, window_params = [{transform_indices = @transform_0, window_bounds = array<i64: 128, 128>}, {pipeline_mode = #tpu.pipeline_mode<synchronous>, transform_indices = @transform_1, window_bounds = array<i64: 8, 128>}, {transform_indices = @transform_2, window_bounds = array<i64: 128, 128>}]} {
    %c0 = arith.constant 0 : index
    %c0_0 = arith.constant 0 : index
    %0 = vector.load %arg1[%c0, %c0_0] : memref<128x128xf32, #tpu.memory_space<vmem>>, vector<128x128xf32>
    %c0_1 = arith.constant 0 : index
    %c0_2 = arith.constant 0 : index
    %1 = vector.load %arg2[%c0_1, %c0_2] : memref<8x128xf32, #tpu.memory_space<vmem>>, vector<1x128xf32>
    %2 = vector.broadcast %1 : vector<1x128xf32> to vector<128x128xf32>
    %3 = arith.mulf %0, %2 : vector<128x128xf32>
    %c1 = arith.constant 1 : index
    %c0_3 = arith.constant 0 : index
    %4 = vector.load %arg2[%c1, %c0_3] : memref<8x128xf32, #tpu.memory_space<vmem>>, vector<1x128xf32>
    %5 = vector.broadcast %4 : vector<1x128xf32> to vector<128x128xf32>
    %6 = arith.addf %3, %5 : vector<128x128xf32>
    %cst = arith.constant 0.000000e+00 : f32
    %7 = vector.broadcast %cst : f32 to vector<128x128xf32>
    %8 = arith.maximumf %6, %7 : vector<128x128xf32>
    %c0_4 = arith.constant 0 : index
    %c0_5 = arith.constant 0 : index
    %9 = vector.load %arg3[%c0_4, %c0_5] : memref<128x128xf32, #tpu.memory_space<vmem>>, vector<128x128xf32>
    tpu.vector_store %arg3[%c0_4, %c0_5], %8 {strides = array<i32>} : memref<128x128xf32, #tpu.memory_space<vmem>>, vector<128x128xf32>,
    return
  }
  func.func @transform_0(%arg0: i32) -> (i32, i32) {
    %c0_i32 = arith.constant 0 : i32
    %c0_i32_0 = arith.constant 0 : i32
    return %arg0, %c0_i32 : i32, i32
  }
  func.func @transform_1(%arg0: i32) -> (i32, i32) {
    %c0_i32 = arith.constant 0 : i32
    %c0_i32_0 = arith.constant 0 : i32
    %c0_i32_1 = arith.constant 0 : i32
    return %c0_i32, %c0_i32_0 : i32, i32
  }
  func.func @transform_2(%arg0: i32) -> (i32, i32) {
    %c0_i32 = arith.constant 0 : i32
    %c0_i32_0 = arith.constant 0 : i32
    return %arg0, %c0_i32 : i32, i32
  }
}

module attributes {stable_mosaic.version = 11 : i64} {
  func.func @_bn_relu_add_kernel(%arg0: i32, %arg1: memref<128x128xf32, #tpu.memory_space<vmem>>, %arg2: memref<128x128xf32, #tpu.memory_space<vmem>>, %arg3: memref<8x128xf32, #tpu.memory_space<vmem>>, %arg4: memref<128x128xf32, #tpu.memory_space<vmem>>) attributes {dimension_semantics = [#tpu.dimension_semantics<parallel>], iteration_bounds = array<i64: 1>, scalar_prefetch = 0 : i64, scratch_operands = 0 : i64, tpu.core_type = #tpu.core_type<tc>, window_params = [{transform_indices = @transform_0, window_bounds = array<i64: 128, 128>}, {transform_indices = @transform_1, window_bounds = array<i64: 128, 128>}, {pipeline_mode = #tpu.pipeline_mode<synchronous>, transform_indices = @transform_2, window_bounds = array<i64: 8, 128>}, {transform_indices = @transform_3, window_bounds = array<i64: 128, 128>}]} {
    %c0 = arith.constant 0 : index
    %c0_0 = arith.constant 0 : index
    %0 = vector.load %arg1[%c0, %c0_0] : memref<128x128xf32, #tpu.memory_space<vmem>>, vector<128x128xf32>
    %c0_1 = arith.constant 0 : index
    %c0_2 = arith.constant 0 : index
    %1 = vector.load %arg3[%c0_1, %c0_2] : memref<8x128xf32, #tpu.memory_space<vmem>>, vector<1x128xf32>
    %2 = vector.broadcast %1 : vector<1x128xf32> to vector<128x128xf32>
    %3 = arith.mulf %0, %2 : vector<128x128xf32>
    %c1 = arith.constant 1 : index
    %c0_3 = arith.constant 0 : index
    %4 = vector.load %arg3[%c1, %c0_3] : memref<8x128xf32, #tpu.memory_space<vmem>>, vector<1x128xf32>
    %5 = vector.broadcast %4 : vector<1x128xf32> to vector<128x128xf32>
    %6 = arith.addf %3, %5 : vector<128x128xf32>
    %cst = arith.constant 0.000000e+00 : f32
    %7 = vector.broadcast %cst : f32 to vector<128x128xf32>
    %8 = arith.maximumf %6, %7 : vector<128x128xf32>
    %c0_4 = arith.constant 0 : index
    %c0_5 = arith.constant 0 : index
    %9 = vector.load %arg2[%c0_4, %c0_5] : memref<128x128xf32, #tpu.memory_space<vmem>>, vector<128x128xf32>
    %10 = arith.addf %8, %9 : vector<128x128xf32>
    %c0_6 = arith.constant 0 : index
    %c0_7 = arith.constant 0 : index
    %11 = vector.load %arg4[%c0_6, %c0_7] : memref<128x128xf32, #tpu.memory_space<vmem>>, vector<128x128xf32>
    tpu.vector_store %arg4[%c0_6, %c0_7], %10 {strides = array<i32>} : memref<128x128xf32, #tpu.memory_space<vmem>>, vector<128x128xf32>,
    return
  }
  func.func @transform_0(%arg0: i32) -> (i32, i32) {
    %c0_i32 = arith.constant 0 : i32
    %c0_i32_0 = arith.constant 0 : i32
    return %arg0, %c0_i32 : i32, i32
  }
  func.func @transform_1(%arg0: i32) -> (i32, i32) {
    %c0_i32 = arith.constant 0 : i32
    %c0_i32_0 = arith.constant 0 : i32
    return %arg0, %c0_i32 : i32, i32
  }
  func.func @transform_2(%arg0: i32) -> (i32, i32) {
    %c0_i32 = arith.constant 0 : i32
    %c0_i32_0 = arith.constant 0 : i32
    %c0_i32_1 = arith.constant 0 : i32
    return %c0_i32, %c0_i32_0 : i32, i32
  }
  func.func @transform_3(%arg0: i32) -> (i32, i32) {
    %c0_i32 = arith.constant 0 : i32
    %c0_i32_0 = arith.constant 0 : i32
    return %arg0, %c0_i32 : i32, i32
  }
}

module attributes {stable_mosaic.version = 11 : i64} {
  func.func @_matmul_stats_kernel(%arg0: i32, %arg1: i32, %arg2: i32, %arg3: memref<128x256xbf16, #tpu.memory_space<vmem>>, %arg4: memref<256x128xbf16, #tpu.memory_space<vmem>>, %arg5: memref<128x128xf32, #tpu.memory_space<vmem>>, %arg6: memref<1x8x128xf32, #tpu.memory_space<vmem>>) attributes {dimension_semantics = [#tpu.dimension_semantics<parallel>, #tpu.dimension_semantics<parallel>, #tpu.dimension_semantics<arbitrary>], iteration_bounds = array<i64: 1, 1, 1>, scalar_prefetch = 0 : i64, scratch_operands = 0 : i64, tpu.core_type = #tpu.core_type<tc>, window_params = [{transform_indices = @transform_0, window_bounds = array<i64: 128, 256>}, {transform_indices = @transform_1, window_bounds = array<i64: 256, 128>}, {transform_indices = @transform_2, window_bounds = array<i64: 128, 128>}, {transform_indices = @transform_3, window_bounds = array<i64: 1, 8, 128>}]} {
    %c0_i32 = arith.constant 0 : i32
    %0 = arith.cmpi eq, %arg2, %c0_i32 : i32
    %1 = arith.extui %0 : i1 to i32
    %c0_i32_0 = arith.constant 0 : i32
    %2 = arith.cmpi ne, %1, %c0_i32_0 : i32
    scf.if %2 {
      %cst_10 = arith.constant 0.000000e+00 : f32
      %12 = vector.broadcast %cst_10 : f32 to vector<128x128xf32>
      %c0_11 = arith.constant 0 : index
      %c0_12 = arith.constant 0 : index
      %13 = vector.load %arg5[%c0_11, %c0_12] : memref<128x128xf32, #tpu.memory_space<vmem>>, vector<128x128xf32>
      tpu.vector_store %arg5[%c0_11, %c0_12], %12 {strides = array<i32>} : memref<128x128xf32, #tpu.memory_space<vmem>>, vector<128x128xf32>,
    } else {
    }
    %c0 = arith.constant 0 : index
    %c0_1 = arith.constant 0 : index
    %3 = vector.load %arg5[%c0, %c0_1] : memref<128x128xf32, #tpu.memory_space<vmem>>, vector<128x128xf32>
    %c0_2 = arith.constant 0 : index
    %c0_3 = arith.constant 0 : index
    %4 = vector.load %arg3[%c0_2, %c0_3] : memref<128x256xbf16, #tpu.memory_space<vmem>>, vector<128x256xbf16>
    %c0_4 = arith.constant 0 : index
    %c0_5 = arith.constant 0 : index
    %5 = vector.load %arg4[%c0_4, %c0_5] : memref<256x128xbf16, #tpu.memory_space<vmem>>, vector<256x128xbf16>
    %cst = arith.constant dense<0.000000e+00> : vector<128x128xf32>
    %6 = tpu.matmul %4, %5, %cst {dimension_numbers = #tpu.dot_dimension_numbers<[1], [0], [0], [1], [0, 0, 1, 1], [], []>} : vector<128x256xbf16>, vector<256x128xbf16>, vector<128x128xf32> -> vector<128x128xf32>
    %7 = arith.addf %3, %6 : vector<128x128xf32>
    %c0_6 = arith.constant 0 : index
    %c0_7 = arith.constant 0 : index
    %8 = vector.load %arg5[%c0_6, %c0_7] : memref<128x128xf32, #tpu.memory_space<vmem>>, vector<128x128xf32>
    tpu.vector_store %arg5[%c0_6, %c0_7], %7 {strides = array<i32>} : memref<128x128xf32, #tpu.memory_space<vmem>>, vector<128x128xf32>,
    %c0_i32_8 = arith.constant 0 : i32
    %9 = arith.cmpi eq, %arg2, %c0_i32_8 : i32
    %10 = arith.extui %9 : i1 to i32
    %c0_i32_9 = arith.constant 0 : i32
    %11 = arith.cmpi ne, %10, %c0_i32_9 : i32
    scf.if %11 {
      %c0_10 = arith.constant 0 : index
      %c0_11 = arith.constant 0 : index
      %12 = vector.load %arg5[%c0_10, %c0_11] : memref<128x128xf32, #tpu.memory_space<vmem>>, vector<128x128xf32>
      %cst_12 = arith.constant dense<0.000000e+00> : vector<128xf32>
      %13 = vector.multi_reduction <add>, %12, %cst_12 [0] : vector<128x128xf32> to vector<128xf32>
      %14 = vector.shape_cast %13 : vector<128xf32> to vector<1x128xf32>
      %15 = arith.mulf %12, %12 : vector<128x128xf32>
      %cst_13 = arith.constant dense<0.000000e+00> : vector<128xf32>
      %16 = vector.multi_reduction <add>, %15, %cst_13 [0] : vector<128x128xf32> to vector<128xf32>
      %17 = vector.shape_cast %16 : vector<128xf32> to vector<1x128xf32>
      %cst_14 = arith.constant 0.000000e+00 : f32
      %18 = vector.broadcast %cst_14 : f32 to vector<6x128xf32>
      %19 = tpu.concatenate %14, %17, %18 in 0 : vector<1x128xf32>, vector<1x128xf32>, vector<6x128xf32> -> vector<8x128xf32>
      %c0_15 = arith.constant 0 : index
      %c0_16 = arith.constant 0 : index
      %c0_17 = arith.constant 0 : index
      %20 = vector.load %arg6[%c0_15, %c0_16, %c0_17] : memref<1x8x128xf32, #tpu.memory_space<vmem>>, vector<1x8x128xf32>
      %21 = vector.shape_cast %20 : vector<1x8x128xf32> to vector<8x128xf32>
      %22 = vector.shape_cast %19 : vector<8x128xf32> to vector<1x8x128xf32>
      tpu.vector_store %arg6[%c0_15, %c0_16, %c0_17], %22 {strides = array<i32>} : memref<1x8x128xf32, #tpu.memory_space<vmem>>, vector<1x8x128xf32>,
    } else {
    }
    return
  }
  func.func @transform_0(%arg0: i32, %arg1: i32, %arg2: i32) -> (i32, i32) {
    %c0_i32 = arith.constant 0 : i32
    return %arg0, %arg2 : i32, i32
  }
  func.func @transform_1(%arg0: i32, %arg1: i32, %arg2: i32) -> (i32, i32) {
    %c0_i32 = arith.constant 0 : i32
    return %arg2, %arg1 : i32, i32
  }
  func.func @transform_2(%arg0: i32, %arg1: i32, %arg2: i32) -> (i32, i32) {
    %c0_i32 = arith.constant 0 : i32
    return %arg0, %arg1 : i32, i32
  }
  func.func @transform_3(%arg0: i32, %arg1: i32, %arg2: i32) -> (i32, i32, i32) {
    %c0_i32 = arith.constant 0 : i32
    %c0_i32_0 = arith.constant 0 : i32
    return %arg0, %c0_i32, %arg1 : i32, i32, i32
  }
}

</mosaic_0001>

<bundles_post_ra>
// kernel: residual_block_fwd.10
= control target key start
LH: loop header
LB: loop body
LE: loop exit
PB: predicated region body
PF: predicated region fallthrough
CT: control target
= control target key end

     0   :  { %vm33_vm0 = vcmask 1040384   ;;  %vm35_vm1 = vcmask 1041408   ;;  %s71_s0 = inlined_call_operand.vmem [shape: f32[1,8,128], index: 0, kind: input, shape index: {}]   ;;  %s72_s1 = inlined_call_operand.vmem [shape: f32[8,128], index: 1, kind: input, shape index: {}]   ;;  %s73_s2 = inlined_call_operand.vmem [shape: f32[8,128], index: 2, kind: output, shape index: {}]  }
   0x1   :  { %v11_v0 = vld [vmem:[%s71_s0] sm:$0xff] }
   0x2   :  { %v13_v1 = vmul.f32 0.0078125, %v11_v0  ;;  %v22_v8 = vld [vmem:[%s72_s1] sm:$0x1]  ;;  %v27_v11 = vld [vmem:[%s72_s1 + $0x1] sm:$0x1] }
   0x4   :  { %v14_v2 = vmul.f32 %v13_v1, %v13_v1 }
   0x6   :  { %v16_v3 = vrot.slane %v14_v2, 7 }
   0x8   :  { %v18_v4 = vsub.f32 %v13_v1, %v16_v3 }
   0xa   :  { %v19_v5 = vmax.f32 %v18_v4, 0.0 }
   0xc   :  { %v20_v6 = vadd.f32 1e-05, %v19_v5 }
   0xe   :  { %42 = vrsqrt.f32 %v20_v6 }
  0x1b   :  { %v43_v7 = vpop.eup %42 }
  0x1c   :  { %v24_v9 = vrot.slane %v43_v7, 1 }
  0x1e   :  { %v26_v10 = vmul.f32 %v24_v9, %v22_v8 }
  0x20   :  { %v28_v12 = vmul.f32 %v26_v10, %v13_v1 }
  0x22   :  { %v29_v13 = vsub.f32 %v27_v11, %v28_v12 }
  0x24   :  { %v31_v14 = vrot.slane %v29_v13, 7 }
  0x26   :  { %v34_v15 = vsel %vm33_vm0, %v26_v10, %v31_v14 }
  0x27   :  { %v36_v16 = vsel %vm35_vm1, %v34_v15, 0.0 }
  0x28   :  { %37 = vst [vmem:[%s73_s2] sm:$0xff] %v36_v16 }

// kernel: residual_block_fwd.9
= control target key start
LH: loop header
LB: loop body
LE: loop exit
PB: predicated region body
PF: predicated region fallthrough
CT: control target
= control target key end

     0   :  { %vm384_vm0 = vcmask 1040384   ;;  %vm386_vm1 = vcmask 1041408   ;;  %s613_s1 = inlined_call_operand.vmem [shape: bf16[128,128], index: 1, kind: input, shape index: {}]   ;;  %s614_s0 = inlined_call_operand.vmem [shape: bf16[128,128], index: 0, kind: input, shape index: {}]   ;;  %s615_s2 = inlined_call_operand.vmem [shape: f32[128,128], index: 2, kind: output, shape index: {0}]   ;;  %s616_s3 = inlined_call_operand.vmem [shape: f32[1,8,128], index: 3, kind: output, shape index: {1}]  }
   0x1   :  { %v478_v0 = vld [vmem:[%s613_s1 + $0x38] sm:$0xff]   ;;  %v479_v1 = vld [vmem:[%s613_s1 + $0x30] sm:$0xff]   ;;  %v480_v2 = vld [vmem:[%s613_s1 + $0x28] sm:$0xff]  }
   0x2   :  { %429 = vmatprep.subr.bf16.mxu0 %v478_v0  ;;  %461 = vmatprep.subr.bf16.mxu1 %v478_v0  ;;  %v481_v3 = vld [vmem:[%s613_s1 + $0x20] sm:$0xff]   ;;  %v482_v5 = vld [vmem:[%s613_s1 + $0x18] sm:$0xff]   ;;  %v483_v7 = vld [vmem:[%s613_s1 + $0x10] sm:$0xff]  }
   0x3   :  { %430 = vmatpush3.bf16.msra.mxu0 %v478_v0  ;;  %469 = vmatpush3.bf16.msra.mxu1 %v478_v0  ;;  %v486_v4 = vld [vmem:[%s614_s0] sm:$0xff]   ;;  %v484_v8 = vld [vmem:[%s613_s1 + $0x8] sm:$0xff]   ;;  %v488_v12 = vld [vmem:[%s614_s0 + $0x10] sm:$0xff]  }
   0x4   :  { %431 = vmatprep.subr.bf16.mxu0 %v479_v1  ;;  %462 = vmatprep.subr.bf16.mxu1 %v479_v1  ;;  %v490_v6 = vld [vmem:[%s614_s0 + $0x20] sm:$0xff]   ;;  %v487_v10 = vld [vmem:[%s614_s0 + $0x8] sm:$0xff]   ;;  %v492_v13 = vld [vmem:[%s614_s0 + $0x30] sm:$0xff]  }
   0x5   :  { %445 = vmatprep.mubr.bf16.mxu0 %v486_v4  ;;  %453 = vmatprep.mubr.bf16.mxu1 %v490_v6  ;;  %v485_v9 = vld [vmem:[%s613_s1] sm:$0xff]   ;;  %v491_v11 = vld [vmem:[%s614_s0 + $0x28] sm:$0xff]   ;;  %v489_v14 = vld [vmem:[%s614_s0 + $0x18] sm:$0xff]  }
   0x6   :  { %v493_v15 = vld [vmem:[%s614_s0 + $0x38] sm:$0xff]  }
   0x7   :  { %432 = vmatpush3.bf16.msra.mxu0 %v479_v1  ;;  %470 = vmatpush3.bf16.msra.mxu1 %v479_v1 }
   0x8   :  { %433 = vmatprep.subr.bf16.mxu0 %v480_v2  ;;  %463 = vmatprep.subr.bf16.mxu1 %v480_v2 }
   0xb   :  { %434 = vmatpush3.bf16.msra.mxu0 %v480_v2  ;;  %471 = vmatpush3.bf16.msra.mxu1 %v480_v2 }
   0xc   :  { %435 = vmatprep.subr.bf16.mxu0 %v481_v3  ;;  %464 = vmatprep.subr.bf16.mxu1 %v481_v3 }
   0xf   :  { %436 = vmatpush3.bf16.msra.mxu0 %v481_v3  ;;  %472 = vmatpush3.bf16.msra.mxu1 %v481_v3 }
  0x10   :  { %437 = vmatprep.subr.bf16.mxu0 %v482_v5  ;;  %465 = vmatprep.subr.bf16.mxu1 %v482_v5 }
  0x13   :  { %438 = vmatpush3.bf16.msra.mxu0 %v482_v5  ;;  %473 = vmatpush3.bf16.msra.mxu1 %v482_v5 }
  0x14   :  { %439 = vmatprep.subr.bf16.mxu0 %v483_v7  ;;  %466 = vmatprep.subr.bf16.mxu1 %v483_v7 }
  0x17   :  { %440 = vmatpush3.bf16.msra.mxu0 %v483_v7  ;;  %474 = vmatpush3.bf16.msra.mxu1 %v483_v7 }
  0x18   :  { %441 = vmatprep.subr.bf16.mxu0 %v484_v8  ;;  %467 = vmatprep.subr.bf16.mxu1 %v484_v8 }
  0x1b   :  { %442 = vmatpush3.bf16.msra.mxu0 %v484_v8  ;;  %475 = vmatpush3.bf16.msra.mxu1 %v484_v8 }
  0x1c   :  { %443 = vmatprep.subr.bf16.mxu0 %v485_v9  ;;  %468 = vmatprep.subr.bf16.mxu1 %v485_v9 }
  0x1f   :  { %444 = vmatpush3.bf16.msra.mxu0 %v485_v9  ;;  %476 = vmatpush3.bf16.msra.mxu1 %v485_v9 }
  0x22   :  { %446 = vmatmul.mubr.bf16.vlgmr.msra.gmra.mxu0 %v487_v10  ;;  %454 = vmatmul.mubr.bf16.vlgmr.msra.gmra.mxu1 %v491_v11 }
  0x23   :  { %449 = vmatprep.mubr.bf16.mxu0 %v488_v12  ;;  %457 = vmatprep.mubr.bf16.mxu1 %v492_v13 }
  0x2a   :  { %450 = vmatmul.mubr.bf16.gmra.mxu0 %v489_v14  ;;  %458 = vmatmul.mubr.bf16.gmra.mxu1 %v493_v15 }
  0xe2   :  { %v447_v16 = vpop.f32.mrf.mxu0  ;;  %v455_v17 = vpop.f32.mrf.mxu1 }
  0xe3   :  { %293 = vst [vmem:[%s615_s2 + $0x10] sm:$0xff] %v447_v16  ;;  %301 = vst [vmem:[%s615_s2 + $0x50] sm:$0xff] %v455_v17  ;;  %v349_v31 = vmul.f32 %v447_v16, %v447_v16  ;;  %v357_v59 = vmul.f32 %v455_v17, %v455_v17 }
  0xe4   :  { %v212_v18 = vpop.f32.mrf.mxu0  ;;  %v244_v19 = vpop.f32.mrf.mxu1 }
  0xe5   :  { %291 = vst [vmem:[%s615_s2] sm:$0xff] %v212_v18  ;;  %299 = vst [vmem:[%s615_s2 + $0x40] sm:$0xff] %v244_v19  ;;  %v347_v26 = vmul.f32 %v212_v18, %v212_v18  ;;  %v355_v53 = vmul.f32 %v244_v19, %v244_v19 }
  0xe6   :  { %v448_v20 = vpop.f32.mrf.mxu0  ;;  %v456_v21 = vpop.f32.mrf.mxu1 }
  0xe7   :  { %294 = vst [vmem:[%s615_s2 + $0x18] sm:$0xff] %v448_v20  ;;  %302 = vst [vmem:[%s615_s2 + $0x58] sm:$0xff] %v456_v21  ;;  %v350_v36 = vmul.f32 %v448_v20, %v448_v20  ;;  %v358_v62 = vmul.f32 %v456_v21, %v456_v21 }
  0xe8   :  { %v215_v22 = vpop.f32.mrf.mxu0  ;;  %v247_v23 = vpop.f32.mrf.mxu1 }
  0xe9   :  { %292 = vst [vmem:[%s615_s2 + $0x8] sm:$0xff] %v215_v22  ;;  %v326_v27 = vadd.f32 %v215_v22, %v212_v18  ;;  %v348_v28 = vmul.f32 %v215_v22, %v215_v22  ;;  %300 = vst [vmem:[%s615_s2 + $0x48] sm:$0xff] %v247_v23  ;;  %v356_v57 = vmul.f32 %v247_v23, %v247_v23 }
  0xea   :  { %v451_v24 = vpop.f32.mrf.mxu0  ;;  %v459_v25 = vpop.f32.mrf.mxu1 }
  0xeb   :  { %v327_v32 = vadd.f32 %v447_v16, %v326_v27  ;;  %v363_v33 = vadd.f32 %v348_v28, %v347_v26  ;;  %297 = vst [vmem:[%s615_s2 + $0x30] sm:$0xff] %v451_v24  ;;  %305 = vst [vmem:[%s615_s2 + $0x70] sm:$0xff] %v459_v25  ;;  %v353_v47 = vmul.f32 %v451_v24, %v451_v24 }
  0xec   :  { %v228_v29 = vpop.f32.mrf.mxu0  ;;  %v260_v30 = vpop.f32.mrf.mxu1  ;;  %v361_v7 = vmul.f32 %v459_v25, %v459_v25 }
  0xed   :  { %v364_v37 = vadd.f32 %v363_v33, %v349_v31  ;;  %295 = vst [vmem:[%s615_s2 + $0x20] sm:$0xff] %v228_v29  ;;  %v328_v38 = vadd.f32 %v448_v20, %v327_v32  ;;  %303 = vst [vmem:[%s615_s2 + $0x60] sm:$0xff] %v260_v30  ;;  %v351_v42 = vmul.f32 %v228_v29, %v228_v29 }
  0xee   :  { %v452_v34 = vpop.f32.mrf.mxu0  ;;  %v460_v35 = vpop.f32.mrf.mxu1  ;;  %v359_v2 = vmul.f32 %v260_v30, %v260_v30 }
  0xef   :  { %v329_v41 = vadd.f32 %v328_v38, %v228_v29  ;;  %v365_v43 = vadd.f32 %v364_v37, %v350_v36  ;;  %298 = vst [vmem:[%s615_s2 + $0x38] sm:$0xff] %v452_v34  ;;  %306 = vst [vmem:[%s615_s2 + $0x78] sm:$0xff] %v460_v35  ;;  %v354_v50 = vmul.f32 %v452_v34, %v452_v34 }
  0xf0   :  { %v231_v39 = vpop.f32.mrf.mxu0  ;;  %v263_v40 = vpop.f32.mrf.mxu1  ;;  %v362_v10 = vmul.f32 %v460_v35, %v460_v35 }
  0xf1   :  { %v366_v44 = vadd.f32 %v365_v43, %v351_v42  ;;  %296 = vst [vmem:[%s615_s2 + $0x28] sm:$0xff] %v231_v39  ;;  %v330_v45 = vadd.f32 %v329_v41, %v231_v39  ;;  %v352_v46 = vmul.f32 %v231_v39, %v231_v39  ;;  %304 = vst [vmem:[%s615_s2 + $0x68] sm:$0xff] %v263_v40 }
  0xf2   :  { %v360_v6 = vmul.f32 %v263_v40, %v263_v40 }
  0xf3   :  { %v331_v48 = vadd.f32 %v451_v24, %v330_v45  ;;  %v367_v49 = vadd.f32 %v366_v44, %v352_v46 }
  0xf5   :  { %v368_v51 = vadd.f32 %v367_v49, %v353_v47  ;;  %v332_v52 = vadd.f32 %v452_v34, %v331_v48 }
  0xf7   :  { %v333_v54 = vadd.f32 %v332_v52, %v244_v19  ;;  %v369_v55 = vadd.f32 %v368_v51, %v354_v50 }
  0xf9   :  { %v334_v56 = vadd.f32 %v333_v54, %v247_v23  ;;  %v370_v58 = vadd.f32 %v369_v55, %v355_v53 }
  0xfb   :  { %v335_v60 = vadd.f32 %v455_v17, %v334_v56  ;;  %v371_v61 = vadd.f32 %v370_v58, %v356_v57 }
  0xfd   :  { %v372_v63 = vadd.f32 %v371_v61, %v357_v59  ;;  %v336_v0 = vadd.f32 %v456_v21, %v335_v60 }
  0xff   :  { %v337_v1 = vadd.f32 %v336_v0, %v260_v30  ;;  %v373_v3 = vadd.f32 %v372_v63, %v358_v62 }
 0x101   :  { %v374_v4 = vadd.f32 %v373_v3, %v359_v2  ;;  %v338_v5 = vadd.f32 %v337_v1, %v263_v40 }
 0x103   :  { %v339_v8 = vadd.f32 %v459_v25, %v338_v5  ;;  %v375_v9 = vadd.f32 %v374_v4, %v360_v6 }
 0x105   :  { %v340_v11 = vadd.f32 %v460_v35, %v339_v8  ;;  %v376_v12 = vadd.f32 %v375_v9, %v361_v7 }
 0x107   :  { %v341_v13 = vrot.slane %v340_v11, 4  ;;  %v377_v14 = vadd.f32 %v376_v12, %v362_v10 }
 0x109   :  { %v342_v15 = vadd.f32 %v341_v13, %v340_v11  ;;  %v378_v16 = vrot.slane %v377_v14, 4 }
 0x10b   :  { %v343_v17 = vrot.slane %v342_v15, 2  ;;  %v379_v18 = vadd.f32 %v378_v16, %v377_v14 }
 0x10d   :  { %v344_v19 = vadd.f32 %v343_v17, %v342_v15  ;;  %v380_v20 = vrot.slane %v379_v18, 2 }
 0x10f   :  { %v345_v21 = vrot.slane %v344_v19, 1  ;;  %v381_v22 = vadd.f32 %v380_v20, %v379_v18 }
 0x111   :  { %v382_v23 = vrot.slane %v381_v22, 1  ;;  %v346_v24 = vadd.f32 %v345_v21, %v344_v19 }
 0x113   :  { %v383_v26 = vadd.f32 %v382_v23, %v381_v22 }
 0x115   :  { %v385_v25 = vsel %vm384_vm0, %v346_v24, %v383_v26 }
 0x116   :  { %v387_v27 = vsel %vm386_vm1, %v385_v25, 0.0 }
 0x117   :  { %388 = vst [vmem:[%s616_s3] sm:$0xff] %v387_v27 }

// kernel: residual_block_fwd.11
= control target key start
LH: loop header
LB: loop body
LE: loop exit
PB: predicated region body
PF: predicated region fallthrough
CT: control target
= control target key end

     0   :  { %s242_s0 = inlined_call_operand.vmem [shape: f32[128,128], index: 0, kind: input, shape index: {}]   ;;  %s243_s1 = inlined_call_operand.vmem [shape: f32[8,128], index: 1, kind: input, shape index: {}]   ;;  %s244_s2 = inlined_call_operand.vmem [shape: f32[128,128], index: 2, kind: output, shape index: {}]  }
   0x1   :  { %v11_v0 = vld [vmem:[%s242_s0] sm:$0xff]  ;;  %v12_v4 = vld [vmem:[%s242_s0 + $0x8] sm:$0xff]  ;;  %v13_v5 = vld [vmem:[%s242_s0 + $0x10] sm:$0xff] }
   0x2   :  { %v105_v1 = vld [vmem:[%s243_s1] ss:$0 sm:$0xff]  ;;  %v131_v2 = vld [vmem:[%s243_s1 + $0x1] ss:$0 sm:$0xff]  ;;  %v14_v6 = vld [vmem:[%s242_s0 + $0x18] sm:$0xff] }
   0x3   :  { %v32_v3 = vmul.f32 %v105_v1, %v11_v0  ;;  %v33_v7 = vmul.f32 %v105_v1, %v12_v4  ;;  %v34_v8 = vmul.f32 %v105_v1, %v13_v5  ;;  %v35_v9 = vmul.f32 %v105_v1, %v14_v6  ;;  %v15_v10 = vld [vmem:[%s242_s0 + $0x20] sm:$0xff]  ;;  %v16_v11 = vld [vmem:[%s242_s0 + $0x28] sm:$0xff]  ;;  %v17_v12 = vld [vmem:[%s242_s0 + $0x30] sm:$0xff] }
   0x4   :  { %v36_v14 = vmul.f32 %v105_v1, %v15_v10  ;;  %v37_v15 = vmul.f32 %v105_v1, %v16_v11  ;;  %v38_v16 = vmul.f32 %v105_v1, %v17_v12  ;;  %v18_v17 = vld [vmem:[%s242_s0 + $0x38] sm:$0xff]  ;;  %v19_v22 = vld [vmem:[%s242_s0 + $0x40] sm:$0xff]  ;;  %v20_v27 = vld [vmem:[%s242_s0 + $0x48] sm:$0xff] }
   0x5   :  { %v53_v13 = vadd.f32 %v131_v2, %v32_v3  ;;  %v54_v18 = vadd.f32 %v131_v2, %v33_v7  ;;  %v55_v19 = vadd.f32 %v131_v2, %v34_v8  ;;  %v56_v20 = vadd.f32 %v131_v2, %v35_v9  ;;  %v21_v28 = vld [vmem:[%s242_s0 + $0x50] sm:$0xff]  ;;  %v22_v29 = vld [vmem:[%s242_s0 + $0x58] sm:$0xff]  ;;  %v23_v34 = vld [vmem:[%s242_s0 + $0x60] sm:$0xff] }
   0x6   :  { %v39_v21 = vmul.f32 %v105_v1, %v18_v17  ;;  %v57_v24 = vadd.f32 %v131_v2, %v36_v14  ;;  %v58_v25 = vadd.f32 %v131_v2, %v37_v15  ;;  %v59_v26 = vadd.f32 %v131_v2, %v38_v16  ;;  %v24_v35 = vld [vmem:[%s242_s0 + $0x68] sm:$0xff]  ;;  %v25_v36 = vld [vmem:[%s242_s0 + $0x70] sm:$0xff]  ;;  %v26_v41 = vld [vmem:[%s242_s0 + $0x78] sm:$0xff] }
   0x7   :  { %v69_v23 = vmax.f32 %v53_v13, 0.0  ;;  %v70_v30 = vmax.f32 %v54_v18, 0.0  ;;  %v71_v31 = vmax.f32 %v55_v19, 0.0  ;;  %v72_v32 = vmax.f32 %v56_v20, 0.0 }
   0x8   :  { %v60_v33 = vadd.f32 %v131_v2, %v39_v21  ;;  %v73_v37 = vmax.f32 %v57_v24, 0.0  ;;  %v74_v38 = vmax.f32 %v58_v25, 0.0  ;;  %v75_v39 = vmax.f32 %v59_v26, 0.0 }
   0x9   :  { %85 = vst [vmem:[%s244_s2] sm:$0xff] %v69_v23  ;;  %v40_v40 = vmul.f32 %v105_v1, %v19_v22  ;;  %86 = vst [vmem:[%s244_s2 + $0x8] sm:$0xff] %v70_v30  ;;  %v41_v43 = vmul.f32 %v105_v1, %v20_v27  ;;  %v42_v44 = vmul.f32 %v105_v1, %v21_v28 }
   0xa   :  { %87 = vst [vmem:[%s244_s2 + $0x10] sm:$0xff] %v71_v31  ;;  %88 = vst [vmem:[%s244_s2 + $0x18] sm:$0xff] %v72_v32  ;;  %v76_v42 = vmax.f32 %v60_v33, 0.0  ;;  %v43_v45 = vmul.f32 %v105_v1, %v22_v29  ;;  %v44_v47 = vmul.f32 %v105_v1, %v23_v34  ;;  %v45_v48 = vmul.f32 %v105_v1, %v24_v35 }
   0xb   :  { %89 = vst [vmem:[%s244_s2 + $0x20] sm:$0xff] %v73_v37  ;;  %90 = vst [vmem:[%s244_s2 + $0x28] sm:$0xff] %v74_v38  ;;  %v61_v46 = vadd.f32 %v131_v2, %v40_v40  ;;  %v46_v49 = vmul.f32 %v105_v1, %v25_v36  ;;  %v62_v50 = vadd.f32 %v131_v2, %v41_v43 }
   0xc   :  { %91 = vst [vmem:[%s244_s2 + $0x30] sm:$0xff] %v75_v39  ;;  %92 = vst [vmem:[%s244_s2 + $0x38] sm:$0xff] %v76_v42  ;;  %v63_v51 = vadd.f32 %v131_v2, %v42_v44  ;;  %v64_v52 = vadd.f32 %v131_v2, %v43_v45  ;;  %v47_v53 = vmul.f32 %v105_v1, %v26_v41 }
   0xd   :  { %v77_v54 = vmax.f32 %v61_v46, 0.0  ;;  %v65_v55 = vadd.f32 %v131_v2, %v44_v47  ;;  %v66_v56 = vadd.f32 %v131_v2, %v45_v48  ;;  %v67_v57 = vadd.f32 %v131_v2, %v46_v49 }
   0xe   :  { %v78_v58 = vmax.f32 %v62_v50, 0.0  ;;  %v79_v59 = vmax.f32 %v63_v51, 0.0  ;;  %v80_v60 = vmax.f32 %v64_v52, 0.0  ;;  %v68_v61 = vadd.f32 %v131_v2, %v47_v53 }
   0xf   :  { %93 = vst [vmem:[%s244_s2 + $0x40] sm:$0xff] %v77_v54  ;;  %v81_v62 = vmax.f32 %v65_v55, 0.0  ;;  %v82_v63 = vmax.f32 %v66_v56, 0.0  ;;  %v83_v0 = vmax.f32 %v67_v57, 0.0 }
  0x10   :  { %94 = vst [vmem:[%s244_s2 + $0x48] sm:$0xff] %v78_v58  ;;  %95 = vst [vmem:[%s244_s2 + $0x50] sm:$0xff] %v79_v59  ;;  %v84_v1 = vmax.f32 %v68_v61, 0.0 }
  0x11   :  { %96 = vst [vmem:[%s244_s2 + $0x58] sm:$0xff] %v80_v60  ;;  %97 = vst [vmem:[%s244_s2 + $0x60] sm:$0xff] %v81_v62 }
  0x12   :  { %98 = vst [vmem:[%s244_s2 + $0x68] sm:$0xff] %v82_v63  ;;  %99 = vst [vmem:[%s244_s2 + $0x70] sm:$0xff] %v83_v0 }
  0x13   :  { %100 = vst [vmem:[%s244_s2 + $0x78] sm:$0xff] %v84_v1 }

// kernel: residual_block_fwd.17
= control target key start
LH: loop header
LB: loop body
LE: loop exit
PB: predicated region body
PF: predicated region fallthrough
CT: control target
= control target key end

     0   :  { %s344_s0 = inlined_call_operand.vmem [shape: f32[128,128], index: 0, kind: input, shape index: {}]   ;;  %s345_s1 = inlined_call_operand.vmem [shape: f32[128,128], index: 1, kind: input, shape index: {}]   ;;  %s346_s2 = inlined_call_operand.vmem [shape: f32[8,128], index: 2, kind: input, shape index: {}]   ;;  %s347_s3 = inlined_call_operand.hbm [shape: f32[128,128], index: 3, kind: output, shape index: {}]  }
   0x1   :  { %v15_v0 = vld [vmem:[%s344_s0] sm:$0xff]  ;;  %v16_v4 = vld [vmem:[%s344_s0 + $0x8] sm:$0xff]  ;;  %v17_v6 = vld [vmem:[%s344_s0 + $0x10] sm:$0xff] }
   0x2   :  { %v209_v1 = vld [vmem:[%s346_s2] ss:$0 sm:$0xff]  ;;  %v214_v2 = vld [vmem:[%s346_s2 + $0x1] ss:$0 sm:$0xff]  ;;  %v18_v7 = vld [vmem:[%s344_s0 + $0x18] sm:$0xff] }
   0x3   :  { %v36_v3 = vmul.f32 %v209_v1, %v15_v0  ;;  %v37_v5 = vmul.f32 %v209_v1, %v16_v4  ;;  %v38_v9 = vmul.f32 %v209_v1, %v17_v6  ;;  %v39_v10 = vmul.f32 %v209_v1, %v18_v7  ;;  %v19_v11 = vld [vmem:[%s344_s0 + $0x20] sm:$0xff]  ;;  %v20_v15 = vld [vmem:[%s344_s0 + $0x28] sm:$0xff]  ;;  %v21_v16 = vld [vmem:[%s344_s0 + $0x30] sm:$0xff] }
   0x4   :  { %v89_v12 = vld [vmem:[%s345_s1] sm:$0xff]  ;;  %v40_v14 = vmul.f32 %v209_v1, %v19_v11  ;;  %v90_v18 = vld [vmem:[%s345_s1 + $0x8] sm:$0xff]  ;;  %v41_v21 = vmul.f32 %v209_v1, %v20_v15  ;;  %v22_v22 = vld [vmem:[%s344_s0 + $0x38] sm:$0xff]  ;;  %v42_v27 = vmul.f32 %v209_v1, %v21_v16 }
   0x5   :  { %v57_v8 = vadd.f32 %v214_v2, %v36_v3  ;;  %v58_v13 = vadd.f32 %v214_v2, %v37_v5  ;;  %v59_v19 = vadd.f32 %v214_v2, %v38_v9  ;;  %v60_v20 = vadd.f32 %v214_v2, %v39_v10  ;;  %v91_v24 = vld [vmem:[%s345_s1 + $0x10] sm:$0xff]  ;;  %v92_v25 = vld [vmem:[%s345_s1 + $0x18] sm:$0xff]  ;;  %v23_v29 = vld [vmem:[%s344_s0 + $0x40] sm:$0xff] }
   0x6   :  { %v61_v26 = vadd.f32 %v214_v2, %v40_v14  ;;  %v43_v28 = vmul.f32 %v209_v1, %v22_v22  ;;  %v93_v33 = vld [vmem:[%s345_s1 + $0x20] sm:$0xff]  ;;  %v62_v34 = vadd.f32 %v214_v2, %v41_v21  ;;  %v24_v35 = vld [vmem:[%s344_s0 + $0x48] sm:$0xff]  ;;  %v63_v39 = vadd.f32 %v214_v2, %v42_v27  ;;  %v25_v41 = vld [vmem:[%s344_s0 + $0x50] sm:$0xff] }
   0x7   :  { %v73_v17 = vmax.f32 %v57_v8, 0.0  ;;  %v74_v23 = vmax.f32 %v58_v13, 0.0  ;;  %v75_v31 = vmax.f32 %v59_v19, 0.0  ;;  %v76_v32 = vmax.f32 %v60_v20, 0.0  ;;  %v94_v38 = vld [vmem:[%s345_s1 + $0x28] sm:$0xff]  ;;  %v26_v42 = vld [vmem:[%s344_s0 + $0x58] sm:$0xff] }
   0x8   :  { %v77_v37 = vmax.f32 %v61_v26, 0.0  ;;  %v64_v40 = vadd.f32 %v214_v2, %v43_v28  ;;  %v78_v45 = vmax.f32 %v62_v34, 0.0  ;;  %v95_v46 = vld [vmem:[%s345_s1 + $0x30] sm:$0xff]  ;;  %v96_v47 = vld [vmem:[%s345_s1 + $0x38] sm:$0xff]  ;;  %v44_v48 = vmul.f32 %v209_v1, %v23_v29  ;;  %v27_v49 = vld [vmem:[%s344_s0 + $0x60] sm:$0xff] }
   0x9   :  { %v105_v30 = vadd.f32 %v89_v12, %v73_v17  ;;  %v106_v36 = vadd.f32 %v90_v18, %v74_v23  ;;  %v107_v43 = vadd.f32 %v91_v24, %v75_v31  ;;  %v108_v44 = vadd.f32 %v92_v25, %v76_v32  ;;  %v28_v54 = vld [vmem:[%s344_s0 + $0x68] sm:$0xff]  ;;  %v29_v59 = vld [vmem:[%s344_s0 + $0x70] sm:$0xff]  ;;  %v30_v60 = vld [vmem:[%s344_s0 + $0x78] sm:$0xff] }
   0xa   :  { %v109_v50 = vadd.f32 %v93_v33, %v77_v37  ;;  %v79_v51 = vmax.f32 %v63_v39, 0.0  ;;  %v80_v52 = vmax.f32 %v64_v40, 0.0  ;;  %v45_v53 = vmul.f32 %v209_v1, %v24_v35 }
   0xb   :  { %121 = vst [vmem:[#allocation2] sm:$0xff] %v105_v30  ;;  %122 = vst [vmem:[#allocation2 + $0x8] sm:$0xff] %v106_v36  ;;  %v110_v55 = vadd.f32 %v94_v38, %v78_v45  ;;  %v65_v56 = vadd.f32 %v214_v2, %v44_v48  ;;  %v46_v57 = vmul.f32 %v209_v1, %v25_v41 }
   0xc   :  { %123 = vst [vmem:[#allocation2 + $0x10] sm:$0xff] %v107_v43  ;;  %124 = vst [vmem:[#allocation2 + $0x18] sm:$0xff] %v108_v44  ;;  %v47_v58 = vmul.f32 %v209_v1, %v26_v42 }
   0xd   :  { %8 = vsyncpa [#allocation3], 0  ;;  %125 = vst [vmem:[#allocation2 + $0x20] sm:$0xff] %v109_v50  ;;  %v111_v61 = vadd.f32 %v95_v46, %v79_v51  ;;  %v112_v62 = vadd.f32 %v96_v47, %v80_v52  ;;  %v97_v63 = vld [vmem:[%s345_s1 + $0x40] sm:$0xff]  ;;  %v66_v0 = vadd.f32 %v214_v2, %v45_v53  ;;  %v48_v3 = vmul.f32 %v209_v1, %v27_v49  ;;  %v98_v5 = vld [vmem:[%s345_s1 + $0x48] sm:$0xff]  ;;  %s180_s23 = smov [#allocation2]  }
   0xe   :  { %126 = vst [vmem:[#allocation2 + $0x28] sm:$0xff] %v110_v55  ;;  %v81_v4 = vmax.f32 %v65_v56, 0.0  ;;  %v67_v6 = vadd.f32 %v214_v2, %v46_v57  ;;  %v68_v7 = vadd.f32 %v214_v2, %v47_v58  ;;  %v49_v8 = vmul.f32 %v209_v1, %v28_v54  ;;  %v99_v10 = vld [vmem:[%s345_s1 + $0x50] sm:$0xff]  ;;  %v100_v11 = vld [vmem:[%s345_s1 + $0x58] sm:$0xff]  ;;  %v101_v18 = vld [vmem:[%s345_s1 + $0x60] sm:$0xff]  ;;  %s142_s2 = sshll.u32 %s180_s23, 4  ;;  %s143_s2 = int_to_ptr.vmem [resolvable:$true] %s142_s2 }
   0xf   :  { %127 = vst [vmem:[#allocation2 + $0x30] sm:$0xff] %v111_v61  ;;  %128 = vst [vmem:[#allocation2 + $0x38] sm:$0xff] %v112_v62  ;;  %v82_v9 = vmax.f32 %v66_v0, 0.0  ;;  %v69_v12 = vadd.f32 %v214_v2, %v48_v3  ;;  %v50_v13 = vmul.f32 %v209_v1, %v29_v59  ;;  %v51_v14 = vmul.f32 %v209_v1, %v30_v60  ;;  %v102_v22 = vld [vmem:[%s345_s1 + $0x68] sm:$0xff]  ;;  %v103_v27 = vld [vmem:[%s345_s1 + $0x70] sm:$0xff]  ;;  %s158_s24 = scalar_lea.vmem %s143_s2, 2048  ;;  %p163_p1 = scmp.lt.s32.totalorder %s143_s2, %s143_s2 }
  0x10   :  { %v113_v15 = vadd.f32 %v97_v63, %v81_v4  ;;  %v83_v16 = vmax.f32 %v67_v6, 0.0  ;;  %v84_v17 = vmax.f32 %v68_v7, 0.0  ;;  %v70_v19 = vadd.f32 %v214_v2, %v49_v8  ;;  %v104_v28 = vld [vmem:[%s345_s1 + $0x78] sm:$0xff]  ;;  %p159_p0 = scmp.ne.s32.totalorder %s143_s2, %s158_s24  ;;  %p164_p2 = scmp.lt.s32.totalorder %s158_s24, %s158_s24 }
  0x11   :  { %v114_v20 = vadd.f32 %v98_v5, %v82_v9  ;;  %v85_v21 = vmax.f32 %v69_v12, 0.0  ;;  %v71_v23 = vadd.f32 %v214_v2, %v50_v13  ;;  %v72_v24 = vadd.f32 %v214_v2, %v51_v14 }
  0x12   :  { %129 = vst [vmem:[#allocation2 + $0x40] sm:$0xff] %v113_v15  ;;  %v115_v1 = vadd.f32 %v99_v10, %v83_v16  ;;  %v116_v25 = vadd.f32 %v100_v11, %v84_v17  ;;  %v86_v26 = vmax.f32 %v70_v19, 0.0  ;;  %p165_p3 = por %p164_p2, %p163_p1 }
  0x13   :  { %130 = vst [vmem:[#allocation2 + $0x48] sm:$0xff] %v114_v20  ;;  %v117_v29 = vadd.f32 %v101_v18, %v85_v21  ;;  %v87_v30 = vmax.f32 %v71_v23, 0.0  ;;  %v88_v31 = vmax.f32 %v72_v24, 0.0 }
  0x14   :  { %131 = vst [vmem:[#allocation2 + $0x50] sm:$0xff] %v115_v1  ;;  %132 = vst [vmem:[#allocation2 + $0x58] sm:$0xff] %v116_v25  ;;  %v118_v2 = vadd.f32 %v102_v22, %v86_v26  ;;  %p166_p4 = pnand %p165_p3, %p159_p0 }
  0x15   :  { %133 = vst [vmem:[#allocation2 + $0x60] sm:$0xff] %v117_v29  ;;  %v119_v32 = vadd.f32 %v103_v27, %v87_v30  ;;  %v120_v33 = vadd.f32 %v104_v28, %v88_v31 }
  0x16   :  { %134 = vst [vmem:[#allocation2 + $0x68] sm:$0xff] %v118_v2 }
  0x17   :  { %135 = vst [vmem:[#allocation2 + $0x70] sm:$0xff] %v119_v32  ;;  %136 = vst [vmem:[#allocation2 + $0x78] sm:$0xff] %v120_v33 }
  0x18   :  { %169 = shalt.err (!%p166_p4)
}
  0x19   :  { %s181_s1 = smov 128   ;;  %s182_s25 = smov 8  }
  0x1a   :  { %148 = dma.vmem_to_hbm [thread:$0]  %s143_s2, 2048, %s347_s3, [#allocation3], %s181_s1, %s181_s1, %s182_s25  }
  0x1b   :  { %178 = dma.done.wait [#allocation3], 2048  }
  0x1c   :  { %179 = vsyncadd [#allocation3], 4294965248 }
  0x1d   :  { %152 = vsyncpa [#allocation3], 1 }

// kernel: residual_block_fwd.15
= control target key start
LH: loop header
LB: loop body
LE: loop exit
PB: predicated region body
PF: predicated region fallthrough
CT: control target
= control target key end

     0   :  { %vm480_vm0 = vcmask 1040384   ;;  %vm482_vm1 = vcmask 1041408   ;;  %s837_s1 = inlined_call_operand.vmem [shape: bf16[256,128], index: 1, kind: input, shape index: {}]   ;;  %s838_s0 = inlined_call_operand.vmem [shape: bf16[128,256], index: 0, kind: input, shape index: {}]   ;;  %s839_s2 = inlined_call_operand.vmem [shape: f32[128,128], index: 2, kind: output, shape index: {0}]   ;;  %s840_s3 = inlined_call_operand.vmem [shape: f32[1,8,128], index: 3, kind: output, shape index: {1}]  }
   0x1   :  { %v606_v0 = vld [vmem:[%s837_s1 + $0x78] sm:$0xff]   ;;  %v608_v2 = vld [vmem:[%s837_s1 + $0x70] sm:$0xff]   ;;  %v610_v4 = vld [vmem:[%s837_s1 + $0x68] sm:$0xff]  }
   0x2   :  { %v607_v1 = vld [vmem:[%s837_s1 + $0x38] sm:$0xff]   ;;  %525 = vmatprep.subr.bf16.mxu0 %v606_v0  ;;  %589 = vmatprep.subr.bf16.mxu1 %v606_v0  ;;  %v609_v3 = vld [vmem:[%s837_s1 + $0x30] sm:$0xff]   ;;  %v611_v5 = vld [vmem:[%s837_s1 + $0x28] sm:$0xff]  }
   0x3   :  { %526 = vmatpush3.bf16.msra.mxu0 %v607_v1  ;;  %597 = vmatpush3.bf16.msra.mxu1 %v607_v1  ;;  %v612_v6 = vld [vmem:[%s837_s1 + $0x60] sm:$0xff]   ;;  %v614_v8 = vld [vmem:[%s837_s1 + $0x58] sm:$0xff]   ;;  %v616_v10 = vld [vmem:[%s837_s1 + $0x50] sm:$0xff]  }
   0x4   :  { %527 = vmatprep.subr.bf16.mxu0 %v608_v2  ;;  %590 = vmatprep.subr.bf16.mxu1 %v608_v2  ;;  %v613_v7 = vld [vmem:[%s837_s1 + $0x20] sm:$0xff]   ;;  %v615_v9 = vld [vmem:[%s837_s1 + $0x18] sm:$0xff]   ;;  %v617_v12 = vld [vmem:[%s837_s1 + $0x10] sm:$0xff]  }
   0x5   :  { %v624_v11 = vld [vmem:[%s838_s0 + $0x4] ss:$8 sps:$4 sm:$0xff]   ;;  %v622_v18 = vld [vmem:[%s838_s0] ss:$8 sps:$4 sm:$0xff]   ;;  %v625_v20 = vld [vmem:[%s838_s0 + $0x14] ss:$8 sps:$4 sm:$0xff]  }
   0x6   :  { %v630_v13 = vld [vmem:[%s838_s0 + $0x44] ss:$8 sps:$4 sm:$0xff]   ;;  %306 = vmatprep.mubr.bf16.mxu0 %v624_v11  ;;  %v628_v19 = vld [vmem:[%s838_s0 + $0x40] ss:$8 sps:$4 sm:$0xff]   ;;  %v634_v21 = vld [vmem:[%s838_s0 + $0x54] ss:$8 sps:$4 sm:$0xff]  }
   0x7   :  { %528 = vmatpush3.bf16.msra.mxu0 %v609_v3  ;;  %598 = vmatpush3.bf16.msra.mxu1 %v609_v3  ;;  %v618_v14 = vld [vmem:[%s837_s1 + $0x48] sm:$0xff]   ;;  %v620_v16 = vld [vmem:[%s837_s1 + $0x40] sm:$0xff]   ;;  %v627_v22 = vld [vmem:[%s838_s0 + $0x10] ss:$8 sps:$4 sm:$0xff]  }
   0x8   :  { %529 = vmatprep.subr.bf16.mxu0 %v610_v4  ;;  %591 = vmatprep.subr.bf16.mxu1 %v610_v4  ;;  %v619_v15 = vld [vmem:[%s837_s1 + $0x8] sm:$0xff]   ;;  %v621_v17 = vld [vmem:[%s837_s1] sm:$0xff]   ;;  %v636_v23 = vld [vmem:[%s838_s0 + $0x50] ss:$8 sps:$4 sm:$0xff]  }
   0x9   :  { %338 = vmatprep.mubr.bf16.mxu1 %v630_v13  ;;  %v631_v24 = vld [vmem:[%s838_s0 + $0x24] ss:$8 sps:$4 sm:$0xff]   ;;  %v633_v26 = vld [vmem:[%s838_s0 + $0x20] ss:$8 sps:$4 sm:$0xff]   ;;  %v637_v28 = vld [vmem:[%s838_s0 + $0x34] ss:$8 sps:$4 sm:$0xff]  }
   0xa   :  { %v640_v25 = vld [vmem:[%s838_s0 + $0x64] ss:$8 sps:$4 sm:$0xff]   ;;  %v642_v27 = vld [vmem:[%s838_s0 + $0x60] ss:$8 sps:$4 sm:$0xff]   ;;  %v643_v29 = vld [vmem:[%s838_s0 + $0x74] ss:$8 sps:$4 sm:$0xff]  }
   0xb   :  { %530 = vmatpush3.bf16.msra.mxu0 %v611_v5  ;;  %599 = vmatpush3.bf16.msra.mxu1 %v611_v5  ;;  %v639_v30 = vld [vmem:[%s838_s0 + $0x30] ss:$8 sps:$4 sm:$0xff]  }
   0xc   :  { %531 = vmatprep.subr.bf16.mxu0 %v612_v6  ;;  %592 = vmatprep.subr.bf16.mxu1 %v612_v6  ;;  %v645_v31 = vld [vmem:[%s838_s0 + $0x70] ss:$8 sps:$4 sm:$0xff]  }
   0xf   :  { %532 = vmatpush3.bf16.msra.mxu0 %v613_v7  ;;  %600 = vmatpush3.bf16.msra.mxu1 %v613_v7 }
  0x10   :  { %533 = vmatprep.subr.bf16.mxu0 %v614_v8  ;;  %593 = vmatprep.subr.bf16.mxu1 %v614_v8 }
  0x13   :  { %534 = vmatpush3.bf16.msra.mxu0 %v615_v9  ;;  %601 = vmatpush3.bf16.msra.mxu1 %v615_v9 }
  0x14   :  { %535 = vmatprep.subr.bf16.mxu0 %v616_v10  ;;  %594 = vmatprep.subr.bf16.mxu1 %v616_v10 }
  0x17   :  { %536 = vmatpush3.bf16.msra.mxu0 %v617_v12  ;;  %602 = vmatpush3.bf16.msra.mxu1 %v617_v12 }
  0x18   :  { %537 = vmatprep.subr.bf16.mxu0 %v618_v14  ;;  %595 = vmatprep.subr.bf16.mxu1 %v618_v14 }
  0x1b   :  { %538 = vmatpush3.bf16.msra.mxu0 %v619_v15  ;;  %603 = vmatpush3.bf16.msra.mxu1 %v619_v15 }
  0x1c   :  { %539 = vmatprep.subr.bf16.mxu0 %v620_v16  ;;  %596 = vmatprep.subr.bf16.mxu1 %v620_v16 }
  0x1f   :  { %540 = vmatpush3.bf16.msra.mxu0 %v621_v17  ;;  %604 = vmatpush3.bf16.msra.mxu1 %v621_v17 }
  0x22   :  { %307 = vmatmul.mubr.bf16.vlgmr.msra.gmra.mxu0 %v622_v18  ;;  %339 = vmatmul.mubr.bf16.vlgmr.msra.gmra.mxu1 %v628_v19 }
  0x23   :  { %314 = vmatprep.mubr.bf16.mxu0 %v625_v20  ;;  %346 = vmatprep.mubr.bf16.mxu1 %v634_v21 }
  0x2a   :  { %315 = vmatmul.mubr.bf16.gmra.mxu0 %v627_v22  ;;  %347 = vmatmul.mubr.bf16.gmra.mxu1 %v636_v23 }
  0x2b   :  { %322 = vmatprep.mubr.bf16.mxu0 %v631_v24  ;;  %354 = vmatprep.mubr.bf16.mxu1 %v640_v25 }
  0x32   :  { %323 = vmatmul.mubr.bf16.gmra.mxu0 %v633_v26  ;;  %355 = vmatmul.mubr.bf16.gmra.mxu1 %v642_v27 }
  0x33   :  { %330 = vmatprep.mubr.bf16.mxu0 %v637_v28  ;;  %362 = vmatprep.mubr.bf16.mxu1 %v643_v29 }
  0x3a   :  { %331 = vmatmul.mubr.bf16.gmra.mxu0 %v639_v30  ;;  %363 = vmatmul.mubr.bf16.gmra.mxu1 %v645_v31 }
  0xe2   :  { %v541_v32 = vpop.f32.mrf.mxu0  ;;  %v565_v33 = vpop.f32.mrf.mxu1 }
  0xe4   :  { %v542_v34 = vpop.f32.mrf.mxu0  ;;  %v566_v35 = vpop.f32.mrf.mxu1 }
  0xe5   :  { %v543_v36 = vadd.f32 %v542_v34, %v541_v32  ;;  %v762_v37 = vadd.f32 %v566_v35, %v565_v33 }
  0xe6   :  { %v544_v38 = vpop.f32.mrf.mxu0  ;;  %v568_v39 = vpop.f32.mrf.mxu1 }
  0xe7   :  { %387 = vst [vmem:[%s839_s2] sm:$0xff] %v543_v36  ;;  %395 = vst [vmem:[%s839_s2 + $0x40] sm:$0xff] %v762_v37  ;;  %v443_v1 = vmul.f32 %v543_v36, %v543_v36 }
  0xe8   :  { %v545_v40 = vpop.f32.mrf.mxu0  ;;  %v569_v41 = vpop.f32.mrf.mxu1 }
  0xe9   :  { %v546_v42 = vadd.f32 %v545_v40, %v544_v38  ;;  %v771_v43 = vadd.f32 %v569_v41, %v568_v39  ;;  %v451_v38 = vmul.f32 %v762_v37, %v762_v37 }
  0xea   :  { %v547_v44 = vpop.f32.mrf.mxu0  ;;  %v571_v45 = vpop.f32.mrf.mxu1 }
  0xeb   :  { %388 = vst [vmem:[%s839_s2 + $0x8] sm:$0xff] %v546_v42  ;;  %396 = vst [vmem:[%s839_s2 + $0x48] sm:$0xff] %v771_v43  ;;  %v444_v61 = vmul.f32 %v546_v42, %v546_v42  ;;  %v422_v5 = vadd.f32 %v546_v42, %v543_v36  ;;  %v452_v41 = vmul.f32 %v771_v43, %v771_v43 }
  0xec   :  { %v548_v46 = vpop.f32.mrf.mxu0  ;;  %v572_v47 = vpop.f32.mrf.mxu1 }
  0xed   :  { %v549_v48 = vadd.f32 %v548_v46, %v547_v44  ;;  %v780_v50 = vadd.f32 %v572_v47, %v571_v45  ;;  %v459_v8 = vadd.f32 %v444_v61, %v443_v1 }
  0xee   :  { %v550_v49 = vpop.f32.mrf.mxu0  ;;  %v574_v51 = vpop.f32.mrf.mxu1 }
  0xef   :  { %389 = vst [vmem:[%s839_s2 + $0x10] sm:$0xff] %v549_v48  ;;  %397 = vst [vmem:[%s839_s2 + $0x50] sm:$0xff] %v780_v50  ;;  %v445_v2 = vmul.f32 %v549_v48, %v549_v48  ;;  %v423_v12 = vadd.f32 %v549_v48, %v422_v5  ;;  %v453_v45 = vmul.f32 %v780_v50, %v780_v50 }
  0xf0   :  { %v551_v52 = vpop.f32.mrf.mxu0  ;;  %v575_v53 = vpop.f32.mrf.mxu1 }
  0xf1   :  { %v552_v54 = vadd.f32 %v551_v52, %v550_v49  ;;  %v785_v55 = vadd.f32 %v575_v53, %v574_v51  ;;  %v460_v13 = vadd.f32 %v459_v8, %v445_v2 }
  0xf2   :  { %v553_v56 = vpop.f32.mrf.mxu0  ;;  %v577_v57 = vpop.f32.mrf.mxu1 }
  0xf3   :  { %390 = vst [vmem:[%s839_s2 + $0x18] sm:$0xff] %v552_v54  ;;  %398 = vst [vmem:[%s839_s2 + $0x58] sm:$0xff] %v785_v55  ;;  %v446_v9 = vmul.f32 %v552_v54, %v552_v54  ;;  %v424_v17 = vadd.f32 %v552_v54, %v423_v12  ;;  %v454_v48 = vmul.f32 %v785_v55, %v785_v55 }
  0xf4   :  { %v554_v58 = vpop.f32.mrf.mxu0  ;;  %v578_v59 = vpop.f32.mrf.mxu1 }
  0xf5   :  { %v555_v60 = vadd.f32 %v554_v58, %v553_v56  ;;  %v579_v63 = vadd.f32 %v578_v59, %v577_v57  ;;  %v461_v19 = vadd.f32 %v460_v13, %v446_v9 }
  0xf6   :  { %v556_v62 = vpop.f32.mrf.mxu0  ;;  %v580_v0 = vpop.f32.mrf.mxu1 }
  0xf7   :  { %391 = vst [vmem:[%s839_s2 + $0x20] sm:$0xff] %v555_v60  ;;  %399 = vst [vmem:[%s839_s2 + $0x60] sm:$0xff] %v579_v63  ;;  %v447_v14 = vmul.f32 %v555_v60, %v555_v60  ;;  %v425_v23 = vadd.f32 %v555_v60, %v424_v17 }
  0xf8   :  { %v557_v3 = vpop.f32.mrf.mxu0  ;;  %v581_v4 = vpop.f32.mrf.mxu1 }
  0xf9   :  { %v558_v6 = vadd.f32 %v557_v3, %v556_v62  ;;  %v582_v7 = vadd.f32 %v581_v4, %v580_v0  ;;  %v462_v25 = vadd.f32 %v461_v19, %v447_v14 }
  0xfa   :  { %v559_v10 = vpop.f32.mrf.mxu0  ;;  %v583_v11 = vpop.f32.mrf.mxu1 }
  0xfb   :  { %392 = vst [vmem:[%s839_s2 + $0x28] sm:$0xff] %v558_v6  ;;  %400 = vst [vmem:[%s839_s2 + $0x68] sm:$0xff] %v582_v7  ;;  %v448_v24 = vmul.f32 %v558_v6, %v558_v6  ;;  %v426_v28 = vadd.f32 %v558_v6, %v425_v23  ;;  %v456_v56 = vmul.f32 %v582_v7, %v582_v7 }
  0xfc   :  { %v560_v15 = vpop.f32.mrf.mxu0  ;;  %v584_v16 = vpop.f32.mrf.mxu1 }
  0xfd   :  { %v561_v18 = vadd.f32 %v560_v15, %v559_v10  ;;  %v585_v21 = vadd.f32 %v584_v16, %v583_v11  ;;  %v463_v32 = vadd.f32 %v462_v25, %v448_v24 }
  0xfe   :  { %v562_v20 = vpop.f32.mrf.mxu0  ;;  %v586_v22 = vpop.f32.mrf.mxu1 }
  0xff   :  { %393 = vst [vmem:[%s839_s2 + $0x30] sm:$0xff] %v561_v18  ;;  %v449_v29 = vmul.f32 %v561_v18, %v561_v18  ;;  %401 = vst [vmem:[%s839_s2 + $0x70] sm:$0xff] %v585_v21  ;;  %v427_v33 = vadd.f32 %v561_v18, %v426_v28  ;;  %v457_v59 = vmul.f32 %v585_v21, %v585_v21 }
 0x100   :  { %v563_v26 = vpop.f32.mrf.mxu0  ;;  %v587_v27 = vpop.f32.mrf.mxu1 }
 0x101   :  { %v564_v30 = vadd.f32 %v563_v26, %v562_v20  ;;  %v588_v31 = vadd.f32 %v587_v27, %v586_v22  ;;  %v464_v34 = vadd.f32 %v463_v32, %v449_v29 }
 0x103   :  { %394 = vst [vmem:[%s839_s2 + $0x38] sm:$0xff] %v564_v30  ;;  %v428_v35 = vadd.f32 %v564_v30, %v427_v33  ;;  %v450_v36 = vmul.f32 %v564_v30, %v564_v30  ;;  %402 = vst [vmem:[%s839_s2 + $0x78] sm:$0xff] %v588_v31  ;;  %v458_v62 = vmul.f32 %v588_v31, %v588_v31 }
 0x105   :  { %v429_v39 = vadd.f32 %v762_v37, %v428_v35  ;;  %v465_v40 = vadd.f32 %v464_v34, %v450_v36  ;;  %v455_v37 = vmul.f32 %v579_v63, %v579_v63 }
 0x107   :  { %v430_v42 = vadd.f32 %v771_v43, %v429_v39  ;;  %v466_v44 = vadd.f32 %v465_v40, %v451_v38 }
 0x109   :  { %v467_v46 = vadd.f32 %v466_v44, %v452_v41  ;;  %v431_v47 = vadd.f32 %v780_v50, %v430_v42 }
 0x10b   :  { %v432_v49 = vadd.f32 %v785_v55, %v431_v47  ;;  %v468_v51 = vadd.f32 %v467_v46, %v453_v45 }
 0x10d   :  { %v433_v52 = vadd.f32 %v579_v63, %v432_v49  ;;  %v469_v53 = vadd.f32 %v468_v51, %v454_v48 }
 0x10f   :  { %v434_v54 = vadd.f32 %v582_v7, %v433_v52  ;;  %v470_v57 = vadd.f32 %v469_v53, %v455_v37 }
 0x111   :  { %v471_v43 = vadd.f32 %v470_v57, %v456_v56  ;;  %v435_v58 = vadd.f32 %v585_v21, %v434_v54 }
 0x113   :  { %v472_v60 = vadd.f32 %v471_v43, %v457_v59  ;;  %v436_v61 = vadd.f32 %v588_v31, %v435_v58 }
 0x115   :  { %v437_v0 = vrot.slane %v436_v61, 4  ;;  %v473_v50 = vadd.f32 %v472_v60, %v458_v62 }
 0x117   :  { %v438_v1 = vadd.f32 %v437_v0, %v436_v61  ;;  %v474_v2 = vrot.slane %v473_v50, 4 }
 0x119   :  { %v439_v3 = vrot.slane %v438_v1, 2  ;;  %v475_v4 = vadd.f32 %v474_v2, %v473_v50 }
 0x11b   :  { %v440_v55 = vadd.f32 %v439_v3, %v438_v1  ;;  %v476_v5 = vrot.slane %v475_v4, 2 }
 0x11d   :  { %v441_v6 = vrot.slane %v440_v55, 1  ;;  %v477_v63 = vadd.f32 %v476_v5, %v475_v4 }
 0x11f   :  { %v478_v8 = vrot.slane %v477_v63, 1  ;;  %v442_v7 = vadd.f32 %v441_v6, %v440_v55 }
 0x121   :  { %v479_v9 = vadd.f32 %v478_v8, %v477_v63 }
 0x123   :  { %v481_v10 = vsel %vm480_vm0, %v442_v7, %v479_v9 }
 0x124   :  { %v483_v11 = vsel %vm482_vm1, %v481_v10, 0.0 }
 0x125   :  { %484 = vst [vmem:[%s840_s3] sm:$0xff] %v483_v11 }

</bundles_post_ra>
